<compile_context>
chip_gen: v7x
topology: tpu7x:2x2x1
jax: 0.10.0
libtpu: 0.0.40
codegen_flags: <defaults>
</compile_context>

<pallas_src>
import functools

import jax
import jax.numpy as jnp
from jax.experimental import pallas as pl
from jax.experimental.pallas import tpu as pltpu


_NATIVE_COMPUTE_DTYPES = (
    jnp.dtype(jnp.float32),
    jnp.dtype(jnp.bfloat16),
    jnp.dtype(jnp.float16),
)


def _topk_acc_kernel(pred_ref, gt_ref, out_ref, *, k, n_total):
    i = pl.program_id(0)

    pred = pred_ref[...]                          # (tn, C) native dtype
    if pred.dtype not in _NATIVE_COMPUTE_DTYPES:
        pred = pred.astype(jnp.float32)           # e.g. int8 / fp8 inputs only
    gt = gt_ref[...]                              # (tn, 1) int32
    tn, c = pred.shape

    class_idx = jax.lax.broadcasted_iota(jnp.int32, (tn, c), 1)

    # pred[row, gt[row]] via one-hot mask + one row reduce (exact in native
    # dtype: the sum has a single non-zero term, adding zeros is exact).
    is_gt = class_idx == gt
    gt_val = jnp.sum(jnp.where(is_gt, pred, jnp.zeros_like(pred)),
                     axis=1, keepdims=True)       # (tn, 1)

    # Rank of the gt logit (lower-index tie-break), single fused row reduce.
    # NOTE: NaN gt logit => rank 0 (counted correct); edge case only.
    ahead = (pred > gt_val) | ((pred == gt_val) & (class_idx < gt))
    rank = jnp.sum(ahead.astype(jnp.int32), axis=1, keepdims=True)  # (tn, 1)

    # Mask out padded rows of a partial last tile, count hits in int32.
    row = i * tn + jax.lax.broadcasted_iota(jnp.int32, (tn, 1), 0)
    hit = (rank < k) & (row < n_total)            # (tn, 1) bool
    partial = jnp.sum(hit.astype(jnp.int32), axis=0, keepdims=True)  # (1, 1)

    # Per-tile partial count, lane-broadcast into an aligned (1, 1, 128) block.
    # Keeps the batch grid axis fully "parallel" (no carried accumulator).
    out_ref[...] = jnp.broadcast_to(partial[None], out_ref.shape)


def topk_accuracy(pred, gt, k, tile_n=None):
    """pred: (N, C) float logits, gt: (N,) int labels -> scalar accuracy."""
    n, c = pred.shape
    gt2d = gt.reshape(n, 1).astype(jnp.int32)
    itemsize = jnp.dtype(pred.dtype).itemsize

    # Sublane packing: rows of sub-32-bit dtypes pack in pairs/quads.
    align = 8 * max(1, 4 // itemsize)             # f32: 8, bf16/f16: 16, 8-bit: 32

    if tile_n is None:
        # ~4 MiB pred tile (x2 double-buffered) amortizes per-step overhead;
        # row cap bounds the lane-padded gt tile and in-kernel temporaries.
        budget = 4 * 1024 * 1024
        tile_n = min(4096, max(1, budget // (c * itemsize)))
    if tile_n >= n:
        tile_n = n                                # single tile == full batch dim
    else:
        tile_n = max(align, (tile_n // align) * align)
    num_tiles = pl.cdiv(n, tile_n)

    kernel = functools.partial(_topk_acc_kernel, k=int(k), n_total=int(n))
    partials = pl.pallas_call(
        kernel,
        out_shape=jax.ShapeDtypeStruct((num_tiles, 1, 128), jnp.int32),
        grid_spec=pltpu.PrefetchScalarGridSpec(
            num_scalar_prefetch=0,
            grid=(num_tiles,),
            in_specs=[
                pl.BlockSpec((tile_n, c), lambda i: (i, 0)),     # pred, native dtype
                pl.BlockSpec((tile_n, 1), lambda i: (i, 0)),     # gt labels
            ],
            out_specs=pl.BlockSpec((1, 1, 128), lambda i: (i, 0, 0)),
        ),
        compiler_params=pltpu.CompilerParams(
            dimension_semantics=("parallel",),    # independent per-tile partials
            vmem_limit_bytes=48 * 1024 * 1024,
        ),
    )(pred, gt2d)

    hits = jnp.sum(partials[:, 0, 0])             # all 128 lanes hold the same count
    return hits.astype(jnp.float32) / jnp.float32(n)


def _reference(pred, gt, k):
    topk_idx = jax.lax.top_k(pred, k)[1]
    return jnp.mean(jnp.sum(topk_idx == gt[:, None], axis=1).astype(jnp.float32))


if __name__ == "__main__":
    key = jax.random.PRNGKey(0)
    kp, kg, kp2, kg2, kp3, kg3 = jax.random.split(key, 6)

    # Case 1: small, single tile (matches the module's typical (N, C) logits).
    N, C, K = 8, 32, 3
    pred = jax.random.normal(kp, (N, C), dtype=jnp.float32)
    gt = jax.random.randint(kg, (N,), 0, C, dtype=jnp.int32)
    acc = jax.block_until_ready(topk_accuracy(pred, gt, K))
    ref = _reference(pred, gt, K)
    assert abs(float(acc) - float(ref)) < 1e-6, (float(acc), float(ref))

    # Case 2: multiple grid tiles with a partial last tile (exercises the
    # per-tile partial counts + row-mask path).
    N2 = 20
    pred2 = jax.random.normal(kp2, (N2, C), dtype=jnp.float32)
    gt2 = jax.random.randint(kg2, (N2,), 0, C, dtype=jnp.int32)
    acc2 = jax.block_until_ready(topk_accuracy(pred2, gt2, K, tile_n=8))
    ref2 = _reference(pred2, gt2, K)
    assert abs(float(acc2) - float(ref2)) < 1e-6, (float(acc2), float(ref2))

    # Case 3: bf16 logits, native (no-upcast) compute path, bf16 row alignment.
    # Values are per-row-unique small integers (exact in bf16, tie-free).
    N3, K3 = 40, 5
    scores = jax.random.normal(kp3, (N3, C), dtype=jnp.float32)
    pred3 = jnp.argsort(jnp.argsort(scores, axis=1), axis=1).astype(jnp.bfloat16)
    gt3 = jax.random.randint(kg3, (N3,), 0, C, dtype=jnp.int32)
    acc3 = jax.block_until_ready(topk_accuracy(pred3, gt3, K3, tile_n=16))
    ref3 = _reference(pred3, gt3, K3)
    assert abs(float(acc3) - float(ref3)) < 1e-6, (float(acc3), float(ref3))

    print("KERNEL_OK")
</pallas_src>

<mosaic_0001>
module attributes {stable_mosaic.version = 11 : i64} {
  func.func @_topk_acc_kernel(%arg0: i32, %arg1: memref<8x32xf32, #tpu.memory_space<vmem>>, %arg2: memref<8x1xi32, #tpu.memory_space<vmem>>, %arg3: memref<1x1x128xi32, #tpu.memory_space<vmem>>) attributes {dimension_semantics = [#tpu.dimension_semantics<parallel>], iteration_bounds = array<i64: 1>, scalar_prefetch = 0 : i64, scratch_operands = 0 : i64, tpu.core_type = #tpu.core_type<tc>, window_params = [{transform_indices = @transform_0, window_bounds = array<i64: 8, 32>}, {transform_indices = @transform_1, window_bounds = array<i64: 8, 1>}, {transform_indices = @transform_2, window_bounds = array<i64: 1, 1, 128>}]} {
    %c0 = arith.constant 0 : index
    %c0_0 = arith.constant 0 : index
    %0 = vector.load %arg1[%c0, %c0_0] : memref<8x32xf32, #tpu.memory_space<vmem>>, vector<8x32xf32>
    %c0_1 = arith.constant 0 : index
    %c0_2 = arith.constant 0 : index
    %1 = vector.load %arg2[%c0_1, %c0_2] : memref<8x1xi32, #tpu.memory_space<vmem>>, vector<8x1xi32>
    %2 = tpu.iota {dimensions = array<i32: 1>} : vector<8x32xi32>
    %3 = vector.broadcast %1 : vector<8x1xi32> to vector<8x32xi32>
    %4 = arith.cmpi eq, %2, %3 : vector<8x32xi32>
    %cst = arith.constant 0.000000e+00 : f32
    %5 = vector.broadcast %cst : f32 to vector<8x32xf32>
    %6 = arith.select %4, %0, %5 : vector<8x32xi1>, vector<8x32xf32>
    %cst_3 = arith.constant dense<0.000000e+00> : vector<8xf32>
    %7 = vector.multi_reduction <add>, %6, %cst_3 [1] : vector<8x32xf32> to vector<8xf32>
    %8 = vector.shape_cast %7 : vector<8xf32> to vector<8x1xf32>
    %9 = vector.broadcast %8 : vector<8x1xf32> to vector<8x32xf32>
    %10 = arith.cmpf ogt, %0, %9 : vector<8x32xf32>
    %11 = vector.broadcast %8 : vector<8x1xf32> to vector<8x32xf32>
    %12 = arith.cmpf oeq, %0, %11 : vector<8x32xf32>
    %13 = vector.broadcast %1 : vector<8x1xi32> to vector<8x32xi32>
    %14 = arith.cmpi slt, %2, %13 : vector<8x32xi32>
    %15 = arith.andi %12, %14 : vector<8x32xi1>
    %16 = arith.ori %10, %15 : vector<8x32xi1>
    %17 = arith.extui %16 : vector<8x32xi1> to vector<8x32xi32>
    %cst_4 = arith.constant dense<0> : vector<8xi32>
    %18 = vector.multi_reduction <add>, %17, %cst_4 [1] : vector<8x32xi32> to vector<8xi32>
    %19 = vector.shape_cast %18 : vector<8xi32> to vector<8x1xi32>
    %c8_i32 = arith.constant 8 : i32
    %20 = arith.muli %arg0, %c8_i32 : i32
    %21 = tpu.iota {dimensions = array<i32: 0>} : vector<8x1xi32>
    %22 = vector.broadcast %20 : i32 to vector<8x1xi32>
    %23 = arith.addi %22, %21 : vector<8x1xi32>
    %c3_i32 = arith.constant 3 : i32
    %24 = vector.broadcast %c3_i32 : i32 to vector<8x1xi32>
    %25 = arith.cmpi slt, %19, %24 : vector<8x1xi32>
    %c8_i32_5 = arith.constant 8 : i32
    %26 = vector.broadcast %c8_i32_5 : i32 to vector<8x1xi32>
    %27 = arith.cmpi slt, %23, %26 : vector<8x1xi32>
    %28 = arith.andi %25, %27 : vector<8x1xi1>
    %29 = arith.extui %28 : vector<8x1xi1> to vector<8x1xi32>
    %cst_6 = arith.constant dense<0> : vector<1xi32>
    %30 = vector.multi_reduction <add>, %29, %cst_6 [0] : vector<8x1xi32> to vector<1xi32>
    %31 = vector.shape_cast %30 : vector<1xi32> to vector<1x1xi32>
    %32 = vector.shape_cast %31 : vector<1x1xi32> to vector<1x1x1xi32>
    %33 = vector.shape_cast %32 : vector<1x1x1xi32> to vector<1x1x1xi32>
    %34 = vector.broadcast %33 : vector<1x1x1xi32> to vector<1x1x128xi32>
    %c0_7 = arith.constant 0 : index
    %c0_8 = arith.constant 0 : index
    %c0_9 = arith.constant 0 : index
    %35 = vector.load %arg3[%c0_7, %c0_8, %c0_9] : memref<1x1x128xi32, #tpu.memory_space<vmem>>, vector<1x1x128xi32>
    tpu.vector_store %arg3[%c0_7, %c0_8, %c0_9], %34 {strides = array<i32>} : memref<1x1x128xi32, #tpu.memory_space<vmem>>, vector<1x1x128xi32>,
    return
  }
  func.func @transform_0(%arg0: i32) -> (i32, i32) {
    %c0_i32 = arith.constant 0 : i32
    %c0_i32_0 = arith.constant 0 : i32
    return %arg0, %c0_i32 : i32, i32
  }
  func.func @transform_1(%arg0: i32) -> (i32, i32) {
    %c0_i32 = arith.constant 0 : i32
    %c0_i32_0 = arith.constant 0 : i32
    return %arg0, %c0_i32 : i32, i32
  }
  func.func @transform_2(%arg0: i32) -> (i32, i32, i32) {
    %c0_i32 = arith.constant 0 : i32
    %c0_i32_0 = arith.constant 0 : i32
    %c0_i32_1 = arith.constant 0 : i32
    return %arg0, %c0_i32, %c0_i32_0 : i32, i32, i32
  }
}

</mosaic_0001>

<bundles_post_ra>
// kernel: tpu_custom_call.1
= control target key start
LH: loop header
LB: loop body
LE: loop exit
PB: predicated region body
PF: predicated region fallthrough
CT: control target
= control target key end

     0   :  { %s136_s0 = inlined_call_operand.vmem [shape: f32[8,32], index: 0, kind: input, shape index: {}]   ;;  %s137_s1 = inlined_call_operand.vmem [shape: s32[8,1], index: 1, kind: input, shape index: {}]   ;;  %s138_s2 = inlined_call_operand.hbm [shape: s32[1,1,128], index: 2, kind: output, shape index: {}]  }
   0x1   :  { %v13_v0 = vld [vmem:[%s137_s1] sm:$0xff] }
   0x2   :  { %7 = vsyncpa [#allocation3], 0  ;;  %v101_v1 = vmov 0   ;;  %v14_v2 = vlaneseq  ;;  %v12_v4 = vld [vmem:[%s136_s0] sm:$0xff]  ;;  %vm21_vm0 = vcmask 261120   ;;  %s102_s0 = smov [#allocation2]  }
   0x3   :  { %76 = vset.pattern.permute.xlu0 %v101_v1  ;;  %s66_s1 = sshll.u32 %s102_s0, 4  ;;  %s67_s1 = int_to_ptr.vmem [resolvable:$true] %s66_s1 }
   0x4   :  { %17 = vperm.xlu0 %76, %v13_v0   ;;  %v15_v3 = vand.u32 127, %v14_v2  ;;  %s77_s13 = scalar_lea.vmem %s67_s1, 16  ;;  %s81_s14 = scalar_lea.vmem %s67_s1, 32 }
   0x5   :  { %p78_p0 = scmp.ne.s32.totalorder %s67_s1, %s77_s13  ;;  %p82_p1 = scmp.lt.s32.totalorder %s67_s1, %s67_s1 }
   0x6   :  { %p83_p2 = scmp.lt.s32.totalorder %s81_s14, %s77_s13 }
   0x8   :  { %p84_p3 = por %p83_p2, %p82_p1 }
   0xa   :  { %p85_p4 = pnand %p84_p3, %p78_p0 }
  0x83   :  { %v18_v5 = vpop.permute.xlu0 %17 }
  0x84   :  { %vm19_vm1 = vcmp.eq.s32.totalorder %v15_v3, %v18_v5  ;;  %vm27_vm2 = vcmp.lt.s32.totalorder %v15_v3, %v18_v5 }
  0x85   :  { %v20_v6 = vsel %vm19_vm1, %v12_v4, 0.0 }
  0x86   :  { %v22_v7 = vsel %vm21_vm0, %v20_v6, 0.0 }
  0x87   :  { %23 = vadd.xlane.f32.xlu0 %v22_v7 }
 0x114   :  { %v24_v8 = vpop.xlane.xlu0 %23 }
 0x115   :  { %vm25_vm3 = vcmp.gt.f32.partialorder %v12_v4, %v24_v8  ;;  %vm26_vm4 = vcmp.eq.f32.partialorder %v12_v4, %v24_v8 }
 0x116   :  { %vm28_vm5 = vmand %vm26_vm4, %vm27_vm2 }
 0x117   :  { %vm29_vm6 = vmor %vm25_vm3, %vm28_vm5 }
 0x118   :  { %v30_v9 = vsel %vm29_vm6, 1, %v101_v1 }
 0x119   :  { %v31_v10 = vsel %vm21_vm0, %v30_v9, 0 }
 0x11a   :  { %v33_v11 = vshrl.u32 %v31_v10, 16  ;;  %v32_v13 = vand.u32 65535, %v31_v10 }
 0x11c   :  { %v35_v12 = vcvt.s32.f32 %v33_v11  ;;  %v34_v14 = vcvt.s32.f32 %v32_v13 }
 0x11e   :  { %38 = vadd.xlane.f32.xlu1 %v35_v12 }
 0x122   :  { %36 = vadd.xlane.f32.xlu1 %v34_v14 }
 0x1ab   :  { %v39_v15 = vpop.xlane.xlu1 %38 }
 0x1ac   :  { %v41_v16 = vcvt.f32.s32 %v39_v15 }
 0x1ae   :  { %v42_v18 = vshll.u32 %v41_v16, 16 }
 0x1af   :  { %v37_v17 = vpop.xlane.xlu1 %36 }
 0x1b0   :  { %v40_v19 = vcvt.f32.s32 %v37_v17 }
 0x1b2   :  { %v43_v20 = vadd.s32 %v42_v18, %v40_v19 }
 0x1b4   :  { %vm49_vm7 = vcmp.lt.s32.totalorder %v43_v20, 3 }
 0x1b5   :  { %v52_v21 = vsel %vm49_vm7, 1, %v101_v1 }
 0x1b6   :  { %v53_v22 = vrot.slane %v52_v21, 4 }
 0x1b8   :  { %v54_v23 = vadd.s32 %v53_v22, %v52_v21 }
 0x1ba   :  { %v55_v24 = vrot.slane %v54_v23, 2 }
 0x1bc   :  { %v56_v25 = vadd.s32 %v55_v24, %v54_v23 }
 0x1be   :  { %v57_v26 = vrot.slane %v56_v25, 1 }
 0x1c0   :  { %v58_v27 = vadd.s32 %v57_v26, %v56_v25 }
 0x1c2   :  { %59 = vst [vmem:[#allocation2] sm:$0x1] %v58_v27 }
 0x1c3   :  { %88 = shalt.err (!%p85_p4)
}
 0x1c4   :  { %s89_s17 = scalar_lea.hbm %s138_s2, 16 }
 0x1c5   :  { %p90_p5 = scmp.ne.s32.totalorder %s138_s2, %s89_s17  ;;  %p93_p6 = scmp.lt.u32.totalorder %s89_s17, %s138_s2 }
 0x1c7   :  { %p95_p7 = pnand %p93_p6, %p90_p5 }
 0x1c9   :  { %98 = shalt.err (!%p95_p7)
}
 0x1ca   :  { %69 = dma.vmem_to_hbm [thread:$0]  %s67_s1, 16, %s138_s2, [#allocation3]  }
 0x1cb   :  { %99 = dma.done.wait [#allocation3], 16  }
 0x1cc   :  { %100 = vsyncadd [#allocation3], 4294967280 }
 0x1cd   :  { %73 = vsyncpa [#allocation3], 1 }

</bundles_post_ra>
